<compile_context>
chip_gen: v5e
topology: v5e:2x2
jax: 0.10.0
libtpu: 0.0.40
codegen_flags: <defaults>
</compile_context>

<pallas_src>
import functools

import jax
import jax.numpy as jnp
import numpy as np
from jax.experimental import pallas as pl
from jax.experimental.pallas import tpu as pltpu


# ----------------------------------------------------------------------------
# Pallas kernel
# ----------------------------------------------------------------------------
def _dwconv3x3_kernel(w_ref, x_ref, o_ref, xp_ref, *, H, W):
    """Shared 3x3 conv (padding=1) on a tile of flattened planes.

    w_ref : SMEM (10,) f32   -- 9 filter taps (row-major) followed by the bias
    x_ref : VMEM (tb, H*W)   -- unpadded planes, lane dim = H*W (lane dense)
    o_ref : VMEM (tb, H*W)
    xp_ref: VMEM (tb, H*W + 2*(W+1)) f32 scratch -- flat halo buffer
    """
    HW = H * W
    PAD = W + 1                       # max |tap offset| in the flattened plane
    tb = x_ref.shape[0]

    # Build the halo: zero the two pad strips every step (cheap, and safe under
    # megacore grid partitioning), then upcast+copy the interior once.
    zpad = jnp.zeros((tb, PAD), jnp.float32)
    xp_ref[:, 0:PAD] = zpad
    xp_ref[:, PAD + HW:2 * PAD + HW] = zpad
    xp_ref[:, PAD:PAD + HW] = x_ref[...].astype(jnp.float32)

    # Column index within each image row; masks for taps that would cross a row edge.
    col = jax.lax.broadcasted_iota(jnp.int32, (tb, HW), 1) % W
    m_left = col >= 1                 # x[.., j-1] exists
    m_right = col <= W - 2            # x[.., j+1] exists

    acc = jnp.full((tb, HW), w_ref[9], jnp.float32)          # bias
    left = jnp.zeros((tb, HW), jnp.float32)
    right = jnp.zeros((tb, HW), jnp.float32)
    # Nine unrolled MACs; each tap is a static window read of the halo scratch.
    for dh in range(3):
        base = PAD + (dh - 1) * W
        acc = acc + w_ref[3 * dh + 1] * xp_ref[:, base:base + HW]           # centre column
        left = left + w_ref[3 * dh + 0] * xp_ref[:, base - 1:base - 1 + HW]  # j-1 taps
        right = right + w_ref[3 * dh + 2] * xp_ref[:, base + 1:base + 1 + HW]  # j+1 taps
    acc = acc + jnp.where(m_left, left, 0.0) + jnp.where(m_right, right, 0.0)

    o_ref[...] = acc.astype(o_ref.dtype)


# ----------------------------------------------------------------------------
# Tiling plan (VMEM-budget aware, chip aware)
# ----------------------------------------------------------------------------
def _device_budget():
    """Returns (vmem byte budget for our buffers, number of TensorCores)."""
    try:
        kind = jax.devices()[0].device_kind.lower()
    except Exception:  # pragma: no cover - defensive
        kind = ""
    if "v7" in kind or "7x" in kind:
        return 24 << 20, 2            # v7x: 64 MiB VMEM per TC, 2 TCs share the grid
    return 48 << 20, 1                # v5e / v6e: 128 MiB VMEM, single TC


def _plan(B, HW, W, in_bytes, out_bytes):
    """Pick the batch tile tb and a matching vmem_limit_bytes."""
    budget, ncores = _device_budget()
    # Per-plane VMEM bytes: double-buffered input + output blocks + f32 halo scratch.
    bpp = HW * 2 * (in_bytes + out_bytes) + (HW + 2 * (W + 1)) * 4
    cap = max(1, int(budget * 0.7) // bpp)
    if ncores > 1 and B >= 16:
        # Keep >= 2 grid steps so both TensorCores get work (only when each still
        # gets at least one full sublane group of planes).
        cap = min(cap, max(8, ((B // 2) // 8) * 8))
    if B <= cap:
        tb = B                        # single (or per-core) step: largest tile that fits
    else:
        tb = min(B, max(8, (cap // 8) * 8))   # multiple of 8 for (8,128) sublane tiling
    usage = tb * bpp + (2 << 20)
    vmem_limit = int(min(max(budget, int(usage * 1.2)), 112 << 20))
    return tb, vmem_limit


# ----------------------------------------------------------------------------
# Wrapper (forward of depthwise_clipseg_conv)
# ----------------------------------------------------------------------------
def depthwise_clipseg_conv(x, weight, bias):
    """x: (N, C, H, W); weight: (1, 1, 3, 3); bias: (1,). Returns (N, C, H, W)."""
    N, C, H, W = x.shape
    B, HW = N * C, H * W
    xf = x.reshape(B, HW)             # free row-major collapse: lane dim = H*W
    wvec = jnp.concatenate([weight.reshape(-1).astype(jnp.float32),
                            bias.reshape(-1).astype(jnp.float32)])

    in_bytes = jnp.dtype(x.dtype).itemsize
    out_dtype = x.dtype               # keep model dtype; f32 accumulation happens in-kernel
    out_bytes = jnp.dtype(out_dtype).itemsize
    tb, vmem_limit = _plan(B, HW, W, in_bytes, out_bytes)
    grid = (pl.cdiv(B, tb),)

    out = pl.pallas_call(
        functools.partial(_dwconv3x3_kernel, H=H, W=W),
        grid=grid,
        in_specs=[
            pl.BlockSpec(memory_space=pltpu.MemorySpace.SMEM),   # (10,) taps + bias
            pl.BlockSpec((tb, HW), lambda i: (i, 0)),            # unpadded flat planes
        ],
        out_specs=pl.BlockSpec((tb, HW), lambda i: (i, 0)),
        out_shape=jax.ShapeDtypeStruct((B, HW), out_dtype),
        scratch_shapes=[pltpu.VMEM((tb, HW + 2 * (W + 1)), jnp.float32)],
        compiler_params=pltpu.CompilerParams(
            dimension_semantics=("parallel",),
            vmem_limit_bytes=vmem_limit),
        cost_estimate=pl.CostEstimate(
            flops=18 * B * HW,
            transcendentals=0,
            bytes_accessed=B * HW * (in_bytes + out_bytes) + 40),
    )(wvec, xf)
    return out.reshape(N, C, H, W)


# ----------------------------------------------------------------------------
# Pure-JAX reference (same math, via XLA conv) for a sanity check
# ----------------------------------------------------------------------------
def _ref_forward(x, weight, bias):
    N, C, H, W = x.shape
    xb = x.astype(jnp.float32).reshape(N * C, 1, H, W)
    y = jax.lax.conv_general_dilated(
        xb, weight.astype(jnp.float32), window_strides=(1, 1),
        padding=((1, 1), (1, 1)), dimension_numbers=("NCHW", "OIHW", "NCHW"))
    return (y + bias.reshape(1, 1, 1, 1)).reshape(N, C, H, W).astype(x.dtype)


if __name__ == "__main__":
    key = jax.random.PRNGKey(0)
    k_x, k_w, k_b = jax.random.split(key, 3)

    # Small shapes consistent with the module: batch=2, channels=4, spatial=16.
    N, C, H, W = 2, 4, 16, 16
    x = jax.random.normal(k_x, (N, C, H, W), jnp.float32)
    weight = 0.2 * jax.random.normal(k_w, (1, 1, 3, 3), jnp.float32)  # nn.Conv2d(1,1,3) weight
    bias = 0.1 * jax.random.normal(k_b, (1,), jnp.float32)            # nn.Conv2d(1,1,3) bias

    out = jax.block_until_ready(depthwise_clipseg_conv(x, weight, bias))
    ref = jax.block_until_ready(_ref_forward(x, weight, bias))
    np.testing.assert_allclose(np.asarray(out), np.asarray(ref), rtol=1e-4, atol=1e-5)

    print("KERNEL_OK")
</pallas_src>

<mosaic_0001>
module attributes {stable_mosaic.version = 11 : i64} {
  func.func @_dwconv3x3_kernel(%arg0: i32, %arg1: memref<10xf32, #tpu.memory_space<smem>>, %arg2: memref<8x256xf32, #tpu.memory_space<vmem>>, %arg3: memref<8x256xf32, #tpu.memory_space<vmem>>, %arg4: memref<8x290xf32, #tpu.memory_space<vmem>>) attributes {dimension_semantics = [#tpu.dimension_semantics<parallel>], iteration_bounds = array<i64: 1>, scalar_prefetch = 0 : i64, scratch_operands = 1 : i64, tpu.core_type = #tpu.core_type<tc>, window_params = [{transform_indices = @transform_0, window_bounds = array<i64: 10>}, {transform_indices = @transform_1, window_bounds = array<i64: 8, 256>}, {transform_indices = @transform_2, window_bounds = array<i64: 8, 256>}]} {
    %cst = arith.constant 0.000000e+00 : f32
    %0 = vector.broadcast %cst : f32 to vector<8x17xf32>
    %c0 = arith.constant 0 : index
    %c0_0 = arith.constant 0 : index
    %1 = vector.load %arg4[%c0, %c0_0] : memref<8x290xf32, #tpu.memory_space<vmem>>, vector<8x17xf32>
    tpu.vector_store %arg4[%c0, %c0_0], %0 {strides = array<i32>} : memref<8x290xf32, #tpu.memory_space<vmem>>, vector<8x17xf32>,
    %c0_1 = arith.constant 0 : index
    %c273 = arith.constant 273 : index
    %2 = vector.load %arg4[%c0_1, %c273] : memref<8x290xf32, #tpu.memory_space<vmem>>, vector<8x17xf32>
    tpu.vector_store %arg4[%c0_1, %c273], %0 {strides = array<i32>} : memref<8x290xf32, #tpu.memory_space<vmem>>, vector<8x17xf32>,
    %c0_2 = arith.constant 0 : index
    %c0_3 = arith.constant 0 : index
    %3 = vector.load %arg2[%c0_2, %c0_3] : memref<8x256xf32, #tpu.memory_space<vmem>>, vector<8x256xf32>
    %c0_4 = arith.constant 0 : index
    %c17 = arith.constant 17 : index
    %4 = vector.load %arg4[%c0_4, %c17] : memref<8x290xf32, #tpu.memory_space<vmem>>, vector<8x256xf32>
    tpu.vector_store %arg4[%c0_4, %c17], %3 {strides = array<i32>} : memref<8x290xf32, #tpu.memory_space<vmem>>, vector<8x256xf32>,
    %5 = tpu.iota {dimensions = array<i32: 1>} : vector<8x256xi32>
    %c16_i32 = arith.constant 16 : i32
    %c0_i32 = arith.constant 0 : i32
    %6 = arith.cmpi eq, %c16_i32, %c0_i32 : i32
    %c1_i32 = arith.constant 1 : i32
    %7 = arith.select %6, %c1_i32, %c16_i32 : i32
    %8 = vector.broadcast %7 : i32 to vector<8x256xi32>
    %9 = arith.remsi %5, %8 : vector<8x256xi32>
    %c0_i32_5 = arith.constant 0 : i32
    %10 = vector.broadcast %c0_i32_5 : i32 to vector<8x256xi32>
    %11 = arith.cmpi ne, %9, %10 : vector<8x256xi32>
    %c0_i32_6 = arith.constant 0 : i32
    %12 = vector.broadcast %c0_i32_6 : i32 to vector<8x256xi32>
    %13 = arith.cmpi slt, %9, %12 : vector<8x256xi32>
    %c0_i32_7 = arith.constant 0 : i32
    %14 = arith.cmpi slt, %7, %c0_i32_7 : i32
    %15 = vector.broadcast %14 : i1 to vector<8x256xi1>
    %16 = vector.broadcast %15 : vector<8x256xi1> to vector<8x256xi1>
    %17 = arith.xori %13, %16 : vector<8x256xi1>
    %18 = arith.andi %17, %11 : vector<8x256xi1>
    %19 = vector.broadcast %7 : i32 to vector<8x256xi32>
    %20 = arith.addi %9, %19 : vector<8x256xi32>
    %21 = arith.select %18, %20, %9 : vector<8x256xi1>, vector<8x256xi32>
    %c1_i32_8 = arith.constant 1 : i32
    %22 = vector.broadcast %c1_i32_8 : i32 to vector<8x256xi32>
    %23 = arith.cmpi sge, %21, %22 : vector<8x256xi32>
    %c14_i32 = arith.constant 14 : i32
    %24 = vector.broadcast %c14_i32 : i32 to vector<8x256xi32>
    %25 = arith.cmpi sle, %21, %24 : vector<8x256xi32>
    %c9 = arith.constant 9 : index
    %26 = memref.load %arg1[%c9] : memref<10xf32, #tpu.memory_space<smem>>
    %27 = vector.broadcast %26 : f32 to vector<8x256xf32>
    %cst_9 = arith.constant 0.000000e+00 : f32
    %28 = vector.broadcast %cst_9 : f32 to vector<8x256xf32>
    %cst_10 = arith.constant 0.000000e+00 : f32
    %29 = vector.broadcast %cst_10 : f32 to vector<8x256xf32>
    %c1 = arith.constant 1 : index
    %30 = memref.load %arg1[%c1] : memref<10xf32, #tpu.memory_space<smem>>
    %c0_11 = arith.constant 0 : index
    %c1_12 = arith.constant 1 : index
    %31 = vector.load %arg4[%c0_11, %c1_12] : memref<8x290xf32, #tpu.memory_space<vmem>>, vector<8x256xf32>
    %32 = vector.broadcast %30 : f32 to vector<8x256xf32>
    %33 = arith.mulf %32, %31 : vector<8x256xf32>
    %34 = arith.addf %27, %33 : vector<8x256xf32>
    %c0_13 = arith.constant 0 : index
    %35 = memref.load %arg1[%c0_13] : memref<10xf32, #tpu.memory_space<smem>>
    %c0_14 = arith.constant 0 : index
    %c0_15 = arith.constant 0 : index
    %36 = vector.load %arg4[%c0_14, %c0_15] : memref<8x290xf32, #tpu.memory_space<vmem>>, vector<8x256xf32>
    %37 = vector.broadcast %35 : f32 to vector<8x256xf32>
    %38 = arith.mulf %37, %36 : vector<8x256xf32>
    %39 = arith.addf %28, %38 : vector<8x256xf32>
    %c2 = arith.constant 2 : index
    %40 = memref.load %arg1[%c2] : memref<10xf32, #tpu.memory_space<smem>>
    %c0_16 = arith.constant 0 : index
    %c2_17 = arith.constant 2 : index
    %41 = vector.load %arg4[%c0_16, %c2_17] : memref<8x290xf32, #tpu.memory_space<vmem>>, vector<8x256xf32>
    %42 = vector.broadcast %40 : f32 to vector<8x256xf32>
    %43 = arith.mulf %42, %41 : vector<8x256xf32>
    %44 = arith.addf %29, %43 : vector<8x256xf32>
    %c4 = arith.constant 4 : index
    %45 = memref.load %arg1[%c4] : memref<10xf32, #tpu.memory_space<smem>>
    %c0_18 = arith.constant 0 : index
    %c17_19 = arith.constant 17 : index
    %46 = vector.load %arg4[%c0_18, %c17_19] : memref<8x290xf32, #tpu.memory_space<vmem>>, vector<8x256xf32>
    %47 = vector.broadcast %45 : f32 to vector<8x256xf32>
    %48 = arith.mulf %47, %46 : vector<8x256xf32>
    %49 = arith.addf %34, %48 : vector<8x256xf32>
    %c3 = arith.constant 3 : index
    %50 = memref.load %arg1[%c3] : memref<10xf32, #tpu.memory_space<smem>>
    %c0_20 = arith.constant 0 : index
    %c16 = arith.constant 16 : index
    %51 = vector.load %arg4[%c0_20, %c16] : memref<8x290xf32, #tpu.memory_space<vmem>>, vector<8x256xf32>
    %52 = vector.broadcast %50 : f32 to vector<8x256xf32>
    %53 = arith.mulf %52, %51 : vector<8x256xf32>
    %54 = arith.addf %39, %53 : vector<8x256xf32>
    %c5 = arith.constant 5 : index
    %55 = memref.load %arg1[%c5] : memref<10xf32, #tpu.memory_space<smem>>
    %c0_21 = arith.constant 0 : index
    %c18 = arith.constant 18 : index
    %56 = vector.load %arg4[%c0_21, %c18] : memref<8x290xf32, #tpu.memory_space<vmem>>, vector<8x256xf32>
    %57 = vector.broadcast %55 : f32 to vector<8x256xf32>
    %58 = arith.mulf %57, %56 : vector<8x256xf32>
    %59 = arith.addf %44, %58 : vector<8x256xf32>
    %c7 = arith.constant 7 : index
    %60 = memref.load %arg1[%c7] : memref<10xf32, #tpu.memory_space<smem>>
    %c0_22 = arith.constant 0 : index
    %c33 = arith.constant 33 : index
    %61 = vector.load %arg4[%c0_22, %c33] : memref<8x290xf32, #tpu.memory_space<vmem>>, vector<8x256xf32>
    %62 = vector.broadcast %60 : f32 to vector<8x256xf32>
    %63 = arith.mulf %62, %61 : vector<8x256xf32>
    %64 = arith.addf %49, %63 : vector<8x256xf32>
    %c6 = arith.constant 6 : index
    %65 = memref.load %arg1[%c6] : memref<10xf32, #tpu.memory_space<smem>>
    %c0_23 = arith.constant 0 : index
    %c32 = arith.constant 32 : index
    %66 = vector.load %arg4[%c0_23, %c32] : memref<8x290xf32, #tpu.memory_space<vmem>>, vector<8x256xf32>
    %67 = vector.broadcast %65 : f32 to vector<8x256xf32>
    %68 = arith.mulf %67, %66 : vector<8x256xf32>
    %69 = arith.addf %54, %68 : vector<8x256xf32>
    %c8 = arith.constant 8 : index
    %70 = memref.load %arg1[%c8] : memref<10xf32, #tpu.memory_space<smem>>
    %c0_24 = arith.constant 0 : index
    %c34 = arith.constant 34 : index
    %71 = vector.load %arg4[%c0_24, %c34] : memref<8x290xf32, #tpu.memory_space<vmem>>, vector<8x256xf32>
    %72 = vector.broadcast %70 : f32 to vector<8x256xf32>
    %73 = arith.mulf %72, %71 : vector<8x256xf32>
    %74 = arith.addf %59, %73 : vector<8x256xf32>
    %cst_25 = arith.constant 0.000000e+00 : f32
    %75 = vector.broadcast %cst_25 : f32 to vector<8x256xf32>
    %76 = arith.select %23, %69, %75 : vector<8x256xi1>, vector<8x256xf32>
    %77 = arith.addf %64, %76 : vector<8x256xf32>
    %cst_26 = arith.constant 0.000000e+00 : f32
    %78 = vector.broadcast %cst_26 : f32 to vector<8x256xf32>
    %79 = arith.select %25, %74, %78 : vector<8x256xi1>, vector<8x256xf32>
    %80 = arith.addf %77, %79 : vector<8x256xf32>
    %c0_27 = arith.constant 0 : index
    %c0_28 = arith.constant 0 : index
    %81 = vector.load %arg3[%c0_27, %c0_28] : memref<8x256xf32, #tpu.memory_space<vmem>>, vector<8x256xf32>
    tpu.vector_store %arg3[%c0_27, %c0_28], %80 {strides = array<i32>} : memref<8x256xf32, #tpu.memory_space<vmem>>, vector<8x256xf32>,
    return
  }
  func.func @transform_0(%arg0: i32) -> i32 {
    %c0_i32 = arith.constant 0 : i32
    %c0_i32_0 = arith.constant 0 : i32
    return %c0_i32 : i32
  }
  func.func @transform_1(%arg0: i32) -> (i32, i32) {
    %c0_i32 = arith.constant 0 : i32
    %c0_i32_0 = arith.constant 0 : i32
    return %arg0, %c0_i32 : i32, i32
  }
  func.func @transform_2(%arg0: i32) -> (i32, i32) {
    %c0_i32 = arith.constant 0 : i32
    %c0_i32_0 = arith.constant 0 : i32
    return %arg0, %c0_i32 : i32, i32
  }
}

</mosaic_0001>

<bundles_post_ra>
// kernel: tpu_custom_call.1
= control target key start
LH: loop header
LB: loop body
LE: loop exit
PB: predicated region body
PF: predicated region fallthrough
CT: control target
= control target key end

     0   :  { %7 = vsyncpa [#allocation6], 0  ;;  %s515_s0 = inlined_call_operand.hbm [shape: f32[10], index: 0, kind: input, shape index: {}]   ;;  %s516_s1 = inlined_call_operand.hbm [shape: f32[8,256], index: 1, kind: input, shape index: {}]   ;;  %s517_s2 = inlined_call_operand.hbm [shape: f32[8,256], index: 2, kind: output, shape index: {}]  }
   0x1   :  { %8 = vsyncpa [#allocation4], 0 }
   0x2   :  { %9 = vsyncpa [#allocation5], 0  ;;  %s15_s11 = sshll.u32 %s515_s0, 4  ;;  %s24_s14 = sshll.u32 %s516_s1, 4  ;;  %s16_s11 = int_to_ptr.hbm [resolvable:$true] %s15_s11  ;;  %s25_s14 = int_to_ptr.hbm [resolvable:$true] %s24_s14 }
   0x3   :  { %s413_s15 = smov [#allocation3]   ;;  %s414_s16 = smov [#allocation7]  }
   0x4   :  { %18 = dma.hbm_to_smem %s16_s11, 16, %s413_s15, [#allocation6]  }
   0x5   :  { %s26_s17 = sshll.u32 %s414_s16, 4  ;;  %s27_s17 = int_to_ptr.vmem [resolvable:$true] %s26_s17 }
   0x6   :  { %29 = dma.hbm_to_vmem [thread:$0]  %s25_s14, 256, %s27_s17, [#allocation4]  }
   0x7   :  { %407 = dma.done.wait [#allocation6], 16  }
   0x8   :  { %408 = vsyncadd [#allocation6], 4294967280 }
   0x9   :  { %409 = dma.done.wait [#allocation4], 256  }
   0xa   :  { %410 = vsyncadd [#allocation4], 4294967040 }
   0xb   :  { %38 = sfence }
   0xc   :  { %v43_v0 = vld [vmem:[#allocation7] sm:$0xff]  ;;  %s415_s18 = smov 17   ;;  %v44_v1 = vld [vmem:[#allocation7 + $0x8] sm:$0xff]  ;;  %vm39_vm0 = vcmask 138240   ;;  %v416_v2 = vmov 0.0   ;;  %vm41_vm1 = vcmask 277640   ;;  %v59_v48 = vlaneseq }
   0xd   :  { %47 = vrot.lane.b32.xlu0 %v43_v0, %s415_s18  ;;  %40 = vst.msk [vmem:[#allocation2] sm:$0xff] %vm39_vm0, %v416_v2  ;;  %vm55_vm2 = vcmask 1047688   ;;  %s333_s0 = sld [smem:[#allocation3 + $0x5]]  ;;  %s417_s20 = smov 112   ;;  %vm133_vm3 = vcmask 916480   ;;  %vm198_vm4 = vcmask 785408  }
   0xe   :  { %42 = vst.msk [vmem:[#allocation2 + $0x10] sm:$0xff] %vm41_vm1, %v416_v2  ;;  %s336_s1 = sld [smem:[#allocation3 + $0x8]]  ;;  %s418_s21 = smov 96   ;;  %v60_v54 = vand.u32 127, %v59_v48  ;;  %vm274_vm7 = vcmask 1031168   ;;  %vm257_vm10 = vcmask 7168  }
   0xf   :  { %s332_s19 = sld [smem:[#allocation3 + $0x3]]  ;;  %s419_s25 = smov 126   ;;  %vm303_vm11 = vcmask 1039360  }
  0x10   :  { %s335_s22 = sld [smem:[#allocation3 + $0x6]]  ;;  %v66_v61 = vand.u32 15, %v60_v54  ;;  %v61_v63 = vadd.s32 128, %v60_v54  ;;  %s420_s28 = smov 1  }
  0x11   :  { %s330_s23 = sld [smem:[#allocation3 + $0x2]]  ;;  %s421_s3 = smov 127  }
  0x12   :  { %s331_s24 = sld [smem:[#allocation3 + $0x4]]  ;;  %vm86_vm5 = vcmp.ge.s32.totalorder %v66_v61, 1  ;;  %vm88_vm9 = vcmp.le.s32.totalorder %v66_v61, 14  ;;  %s422_s4 = smov [#allocation8]  }
  0x13   :  { %v163_v4 = vstv %s333_s0  ;;  %s334_s26 = sld [smem:[#allocation3 + $0x7]]  ;;  %s315_s5 = sshll.u32 %s422_s4, 4  ;;  %s316_s5 = int_to_ptr.vmem [resolvable:$true] %s315_s5 }
  0x14   :  { %v228_v5 = vstv %s336_s1  ;;  %s484_s27 = sld [smem:[#allocation3]]  ;;  %s317_s8 = sshll.u32 %s517_s2, 4  ;;  %s318_s8 = int_to_ptr.hbm [resolvable:$true] %s317_s8 }
  0x15   :  { %49 = vrot.lane.b32.xlu0 %v44_v1, %s415_s18  ;;  %v143_v11 = vstv %s332_s19  ;;  %s329_s29 = sld [smem:[#allocation3 + $0x1]] }
  0x16   :  { %v208_v17 = vstv %s335_s22  ;;  %s328_s30 = sld [smem:[#allocation3 + $0x9]] }
  0x17   :  { %v112_v26 = vstv %s330_s23 }
  0x18   :  { %v120_v44 = vstv %s331_s24 }
  0x19   :  { %v185_v51 = vstv %s334_s26 }
  0x1a   :  { %v106_v52 = vstv %s484_s27 }
  0x7f   :  { %v48_v3 = vpop.permute.xlu0 %47 }
  0x80   :  { %56 = vst.msk [vmem:[#allocation2] sm:$0xff] %vm55_vm2, %v48_v3 }
  0x87   :  { %v50_v6 = vpop.permute.xlu0 %49  ;;  %v445_v7 = vld [vmem:[#allocation2] sm:$0xff] }
  0x88   :  { %v448_v8 = vsel %vm39_vm0, %v48_v3, %v50_v6  ;;  %58 = vst.msk [vmem:[#allocation2 + $0x10] sm:$0xff] %vm39_vm0, %v50_v6  ;;  %v164_v9 = vmul.f32 %v163_v4, %v445_v7  ;;  %v229_v18 = vmul.f32 %v228_v5, %v445_v7  ;;  %v144_v20 = vmul.f32 %v143_v11, %v445_v7 }
  0x89   :  { %v230_v10 = vmul.f32 %v228_v5, %v448_v8  ;;  %v165_v14 = vmul.f32 %v163_v4, %v448_v8  ;;  %v145_v15 = vmul.f32 %v143_v11, %v448_v8  ;;  %v210_v19 = vmul.f32 %v208_v17, %v448_v8 }
  0x8a   :  { %170 = vrot.lane.b32.xlu1 %v164_v9, %s417_s20  ;;  %v209_v22 = vmul.f32 %v208_v17, %v445_v7  ;;  %v113_v29 = vmul.f32 %v112_v26, %v445_v7  ;;  %v114_v37 = vmul.f32 %v112_v26, %v448_v8  ;;  %v121_v47 = vmul.f32 %v120_v44, %v445_v7 }
  0x8b   :  { %237 = vrot.lane.b32.xlu0 %v230_v10, %s418_s21  ;;  %v122_v53 = vmul.f32 %v120_v44, %v448_v8  ;;  %v186_v57 = vmul.f32 %v185_v51, %v445_v7  ;;  %v107_v59 = vmul.f32 %v106_v52, %v445_v7  ;;  %v73_v9 = vand.u32 15, %v61_v63 }
  0x8d   :  { %vm87_vm6 = vcmp.ge.s32.totalorder %v73_v9, 1  ;;  %vm89_vm8 = vcmp.le.s32.totalorder %v73_v9, 14 }
  0x8f   :  { %v455_v12 = vld [vmem:[#allocation2 + $0x10] sm:$0xff] }
  0x90   :  { %v166_v13 = vmul.f32 %v163_v4, %v455_v12  ;;  %v231_v16 = vmul.f32 %v228_v5, %v455_v12  ;;  %v146_v21 = vmul.f32 %v143_v11, %v455_v12  ;;  %v211_v23 = vmul.f32 %v208_v17, %v455_v12 }
  0x91   :  { %v115_v35 = vmul.f32 %v112_v26, %v455_v12  ;;  %v123_v50 = vmul.f32 %v120_v44, %v455_v12  ;;  %v188_v2 = vmul.f32 %v185_v51, %v455_v12  ;;  %v187_v4 = vmul.f32 %v185_v51, %v448_v8 }
  0x92   :  { %174 = vrot.lane.b32.xlu2 %v166_v13, %s417_s20  ;;  %172 = vrot.lane.b32.xlu1 %v165_v14, %s417_s20  ;;  %v108_v5 = vmul.f32 %v106_v52, %v448_v8 }
  0x93   :  { %152 = vrot.lane.b32.xlu0 %v145_v15, %s417_s20 }
  0x9a   :  { %235 = vrot.lane.b32.xlu2 %v229_v18, %s418_s21  ;;  %239 = vrot.lane.b32.xlu1 %v231_v16, %s418_s21 }
  0x9b   :  { %217 = vrot.lane.b32.xlu0 %v210_v19, %s418_s21 }
  0xa2   :  { %150 = vrot.lane.b32.xlu2 %v144_v20, %s417_s20  ;;  %154 = vrot.lane.b32.xlu1 %v146_v21, %s417_s20 }
  0xaa   :  { %215 = vrot.lane.b32.xlu2 %v209_v22, %s418_s21  ;;  %219 = vrot.lane.b32.xlu1 %v211_v23, %s418_s21 }
  0xec   :  { %v175_v24 = vpop.permute.xlu2 %174 }
  0xed   :  { %v183_v38 = vadd.f32 %v175_v24, %v115_v35 }
  0xf4   :  { %v236_v30 = vpop.permute.xlu2 %235 }
  0xfc   :  { %v171_v25 = vpop.permute.xlu1 %170  ;;  %v151_v46 = vpop.permute.xlu2 %150 }
  0xfd   :  { %v238_v27 = vpop.permute.xlu0 %237 }
  0xfe   :  { %v241_v33 = vsel %vm198_vm4, %v236_v30, %v238_v27  ;;  %v91_v30 = vstv %s328_s30 }
 0x104   :  { %v173_v28 = vpop.permute.xlu1 %172  ;;  %v216_v58 = vpop.permute.xlu2 %215 }
 0x105   :  { %v176_v31 = vsel %vm133_vm3, %v171_v25, %v173_v28  ;;  %v177_v36 = vsel %vm133_vm3, %v173_v28, %v175_v24  ;;  %v153_v41 = vpop.permute.xlu0 %152 }
 0x106   :  { %v181_v32 = vadd.f32 %v176_v31, %v113_v29  ;;  %v182_v39 = vadd.f32 %v177_v36, %v114_v37  ;;  %v156_v56 = vsel %vm133_vm3, %v151_v46, %v153_v41 }
 0x107   :  { %v160_v62 = vadd.f32 %v156_v56, %v107_v59 }
 0x108   :  { %v246_v34 = vadd.f32 %v241_v33, %v181_v32 }
 0x10a   :  { %268 = vrot.lane.b32.xlu2 %v246_v34, %s419_s25 }
 0x10c   :  { %v240_v40 = vpop.permute.xlu1 %239 }
 0x10d   :  { %v242_v42 = vsel %vm198_vm4, %v238_v27, %v240_v40  ;;  %v248_v43 = vadd.f32 %v240_v40, %v183_v38  ;;  %v218_v55 = vpop.permute.xlu0 %217  ;;  %v96_v27 = vstv %s329_s29 }
 0x10e   :  { %v247_v45 = vadd.f32 %v242_v42, %v182_v39  ;;  %v221_v60 = vsel %vm198_vm4, %v216_v58, %v218_v55  ;;  %v99_v28 = vmul.f32 %v96_v27, %v455_v12  ;;  %v97_v39 = vmul.f32 %v96_v27, %v445_v7 }
 0x10f   :  { %272 = vrot.lane.b32.xlu1 %v248_v43, %s419_s25  ;;  %v225_v0 = vadd.f32 %v221_v60, %v160_v62  ;;  %v98_v40 = vmul.f32 %v96_v27, %v448_v8 }
 0x110   :  { %270 = vrot.lane.b32.xlu0 %v247_v45, %s419_s25  ;;  %v102_v31 = vadd.f32 %v99_v28, %v91_v30  ;;  %v100_v42 = vadd.f32 %v97_v39, %v91_v30 }
 0x111   :  { %v249_v11 = vsel %vm86_vm5, %v225_v0, 0.0  ;;  %v101_v45 = vadd.f32 %v98_v40, %v91_v30 }
 0x112   :  { %127 = vrot.lane.b32.xlu2 %v121_v47, %s417_s20 }
 0x114   :  { %v155_v49 = vpop.permute.xlu1 %154 }
 0x115   :  { %v157_v3 = vsel %vm133_vm3, %v153_v41, %v155_v49 }
 0x116   :  { %v161_v10 = vadd.f32 %v157_v3, %v108_v5 }
 0x117   :  { %131 = vrot.lane.b32.xlu1 %v123_v50, %s417_s20 }
 0x118   :  { %129 = vrot.lane.b32.xlu0 %v122_v53, %s417_s20 }
 0x11a   :  { %192 = vrot.lane.b32.xlu2 %v186_v57, %s418_s21 }
 0x11c   :  { %v220_v1 = vpop.permute.xlu1 %219 }
 0x11d   :  { %v222_v6 = vsel %vm198_vm4, %v218_v55, %v220_v1 }
 0x11e   :  { %v226_v13 = vadd.f32 %v222_v6, %v161_v10 }
 0x11f   :  { %196 = vrot.lane.b32.xlu1 %v188_v2, %s418_s21 }
 0x120   :  { %194 = vrot.lane.b32.xlu0 %v187_v4, %s418_s21  ;;  %v250_v14 = vsel %vm87_vm6, %v226_v13, 0.0 }
 0x122   :  { %253 = vrot.lane.b32.xlu2 %v249_v11, %s420_s28 }
 0x128   :  { %255 = vrot.lane.b32.xlu0 %v250_v14, %s420_s28 }
 0x164   :  { %v269_v16 = vpop.permute.xlu2 %268 }
 0x16c   :  { %v128_v22 = vpop.permute.xlu2 %127 }
 0x174   :  { %v193_v24 = vpop.permute.xlu2 %192 }
 0x17c   :  { %v254_v29 = vpop.permute.xlu2 %253 }
 0x181   :  { %v273_v15 = vpop.permute.xlu1 %272 }
 0x182   :  { %v271_v17 = vpop.permute.xlu0 %270 }
 0x183   :  { %v275_v18 = vsel %vm274_vm7, %v269_v16, %v271_v17  ;;  %v276_v19 = vsel %vm274_vm7, %v271_v17, %v273_v15 }
 0x184   :  { %v280_v20 = vsel %vm89_vm8, %v276_v19, 0.0  ;;  %v279_v21 = vsel %vm88_vm9, %v275_v18, 0.0 }
 0x185   :  { %285 = vrot.lane.b32.xlu2 %v280_v20, %s420_s28  ;;  %283 = vrot.lane.b32.xlu1 %v279_v21, %s420_s28 }
 0x189   :  { %v132_v25 = vpop.permute.xlu1 %131 }
 0x18a   :  { %v130_v23 = vpop.permute.xlu0 %129  ;;  %v141_v33 = vadd.f32 %v132_v25, %v102_v31 }
 0x18b   :  { %v134_v41 = vsel %vm133_vm3, %v128_v22, %v130_v23  ;;  %v135_v43 = vsel %vm133_vm3, %v130_v23, %v132_v25 }
 0x18c   :  { %v139_v44 = vadd.f32 %v134_v41, %v100_v42  ;;  %v140_v48 = vadd.f32 %v135_v43, %v101_v45 }
 0x191   :  { %v197_v32 = vpop.permute.xlu1 %196 }
 0x192   :  { %v195_v26 = vpop.permute.xlu0 %194  ;;  %v206_v35 = vadd.f32 %v197_v32, %v141_v33 }
 0x193   :  { %v199_v12 = vsel %vm198_vm4, %v193_v24, %v195_v26  ;;  %v200_v46 = vsel %vm198_vm4, %v195_v26, %v197_v32 }
 0x194   :  { %v204_v47 = vadd.f32 %v199_v12, %v139_v44  ;;  %v205_v50 = vadd.f32 %v200_v46, %v140_v48 }
 0x196   :  { %v262_v51 = vadd.f32 %v254_v29, %v204_v47 }
 0x19a   :  { %v256_v34 = vpop.permute.xlu0 %255 }
 0x19b   :  { %v264_v36 = vadd.f32 %v256_v34, %v206_v35  ;;  %v258_v49 = vsel %vm257_vm10, %v254_v29, %v256_v34 }
 0x19c   :  { %v263_v7 = vadd.f32 %v258_v49, %v205_v50 }
 0x1df   :  { %v286_v37 = vpop.permute.xlu2 %285 }
 0x1e0   :  { %v293_v38 = vadd.f32 %v286_v37, %v264_v36 }
 0x1e2   :  { %301 = vrot.lane.b32.xlu2 %v293_v38, %s421_s3 }
 0x1f7   :  { %v284_v52 = vpop.permute.xlu1 %283 }
 0x1f8   :  { %v287_v8 = vsel %vm257_vm10, %v284_v52, %v286_v37  ;;  %v291_v53 = vadd.f32 %v284_v52, %v262_v51 }
 0x1f9   :  { %v292_v54 = vadd.f32 %v287_v8, %v263_v7 }
 0x1fa   :  { %297 = vrot.lane.b32.xlu0 %v291_v53, %s421_s3 }
 0x1fb   :  { %299 = vrot.lane.b32.xlu1 %v292_v54, %s421_s3 }
 0x23c   :  { %v302_v56 = vpop.permute.xlu2 %301 }
 0x26c   :  { %v298_v55 = vpop.permute.xlu0 %297 }
 0x26d   :  { %v300_v57 = vpop.permute.xlu1 %299 }
 0x26e   :  { %v304_v58 = vsel %vm303_vm11, %v298_v55, %v300_v57  ;;  %v305_v59 = vsel %vm303_vm11, %v300_v57, %v302_v56 }
 0x26f   :  { %308 = vst [vmem:[#allocation8] sm:$0xff] %v304_v58 }
 0x270   :  { %309 = vst [vmem:[#allocation8 + $0x8] sm:$0xff] %v305_v59 }
 0x271   :  { %320 = dma.vmem_to_hbm [thread:$0]  %s316_s5, 256, %s318_s8, [#allocation5]  }
 0x272   :  { %411 = dma.done.wait [#allocation5], 256  }
 0x273   :  { %412 = vsyncadd [#allocation5], 4294967040 }
 0x274   :  { %325 = vsyncpa [#allocation4], 1 }
 0x275   :  { %326 = vsyncpa [#allocation5], 1 }
 0x276   :  { %327 = vsyncpa [#allocation6], 1 }

</bundles_post_ra>
